<compile_context>
chip_gen: v6e
topology: v6e:2x2x1
jax: 0.10.0
libtpu: 0.0.40
codegen_flags: <defaults>
</compile_context>

<pallas_src>
import functools

import jax
import jax.numpy as jnp
from jax.experimental import pallas as pl
from jax.experimental.pallas import tpu as pltpu


def _round_up(x, m):
    return (x + m - 1) // m * m


# ----------------------------------------------------------------------------
# TPU generation caps (detected lazily at first use, not at import time)
# ----------------------------------------------------------------------------
@functools.lru_cache(maxsize=None)
def _tpu_caps():
    """Returns (tm_cap, tn_cap, vmem_limit_bytes) for the current backend."""
    kind = ""
    try:
        kind = jax.devices()[0].device_kind.lower()
    except Exception:
        pass
    if "v5" in kind or "v4" in kind:
        tm_cap, tn_cap = 128, 128            # 128x128 MXU
    else:
        tm_cap, tn_cap = 256, 256            # v6e / v7x: 256x256 MXU
    if "v7" in kind or "tpu7" in kind:
        vmem = 40 * 1024 * 1024              # v7x: 64 MiB physical VMEM / TC
    else:
        vmem = 64 * 1024 * 1024              # v4/v5/v6: 128 MiB physical VMEM
    return tm_cap, tn_cap, vmem


_K_TILE_CAP = 1152                            # K tiling is a VMEM question, not MXU


def _pick_m(M):
    tm_cap = _tpu_caps()[0]
    if M >= 2 * tm_cap:
        return tm_cap
    if M >= 128:
        return 128
    return _round_up(M, 16)                   # bf16 sublane-packing granularity


def _pick_n(N):
    tn_cap = _tpu_caps()[1]
    return tn_cap if N >= tn_cap else 128


def _pick_k(K):
    """Largest exact divisor of round_up(K,128) that is <= _K_TILE_CAP."""
    Kp = _round_up(K, 128)
    for tk in range(min(Kp, _K_TILE_CAP), 127, -128):
        if Kp % tk == 0:
            return tk
    return 128


def _choose_tiles(M, Np, K):
    tm, tn, tk = _pick_m(M), _pick_n(Np), _pick_k(K)
    Mp = _round_up(M, tm)
    # Guarantee >=2 blocks on a 'parallel' grid axis where possible so v7x's
    # second TensorCore has work (no-op on single-TC v5e/v6e).
    if (Mp // tm) * (Np // tn) == 1:
        if Np >= 256:
            tn = 128
        elif Mp >= 256:
            tm = 128
    return tm, tn, tk, Mp


def _bspec(shape, index_map, bufs=None):
    """BlockSpec with optional N-deep pipelining; falls back if unsupported."""
    if bufs is not None and bufs != 2:
        try:
            return pl.BlockSpec(shape, index_map, pipeline_mode=pl.Buffered(bufs))
        except Exception:
            pass
    return pl.BlockSpec(shape, index_map)


# ----------------------------------------------------------------------------
# Fused matmul kernel: out = [relu]( (x @ w) * scale + bias [+ residual] )
# ----------------------------------------------------------------------------
def _mm_kernel(*refs, relu, has_res):
    if has_res:
        x_ref, w_ref, sb_ref, r_ref, o_ref, acc_ref = refs
    else:
        x_ref, w_ref, sb_ref, o_ref, acc_ref = refs
        r_ref = None

    @pl.when(pl.program_id(2) == 0)
    def _():
        acc_ref[...] = jnp.zeros_like(acc_ref)

    acc_ref[...] += jnp.dot(x_ref[...], w_ref[...],
                            preferred_element_type=jnp.float32)

    @pl.when(pl.program_id(2) == pl.num_programs(2) - 1)
    def _():
        y = acc_ref[...] * sb_ref[0:1, :] + sb_ref[1:2, :]
        if has_res:
            y = y + r_ref[...].astype(jnp.float32)
        if relu:
            y = jnp.maximum(y, 0.0)
        o_ref[...] = y.astype(o_ref.dtype)


@functools.lru_cache(maxsize=None)
def _build_matmul(Mp, Kp, Np, tm, tn, tk, relu, has_res, out_dtype):
    grid = (Mp // tm, Np // tn, Kp // tk)
    nbuf = 3 if grid[2] > 1 else None         # deeper buffering on the K stream
    kern = functools.partial(_mm_kernel, relu=relu, has_res=has_res)
    in_specs = [
        _bspec((tm, tk), lambda i, j, k: (i, k), bufs=nbuf),
        _bspec((tk, tn), lambda i, j, k: (k, j), bufs=nbuf),
        pl.BlockSpec((2, tn), lambda i, j, k: (0, j)),      # merged scale/bias
    ]
    if has_res:
        in_specs.append(pl.BlockSpec((tm, tn), lambda i, j, k: (i, j)))
    return pl.pallas_call(
        kern,
        out_shape=jax.ShapeDtypeStruct((Mp, Np), out_dtype),
        grid_spec=pltpu.PrefetchScalarGridSpec(
            num_scalar_prefetch=0,
            grid=grid,
            in_specs=in_specs,
            out_specs=pl.BlockSpec((tm, tn), lambda i, j, k: (i, j)),
            scratch_shapes=[pltpu.VMEM((tm, tn), jnp.float32)],
        ),
        compiler_params=pltpu.CompilerParams(
            dimension_semantics=("parallel", "parallel", "arbitrary"),
            vmem_limit_bytes=_tpu_caps()[2]),
    )


def matmul_prepped(cols, prep, relu=True, residual=None, out_dtype=jnp.bfloat16):
    """cols: (M, K or Kp) activation matrix; prep: matmul-ready weight dict."""
    M, K = cols.shape
    Kp, Np = prep['w'].shape
    N = prep['n']
    assert K in (prep['k'], Kp), (K, prep['k'], Kp)
    tm, tn, tk, Mp = _choose_tiles(M, Np, prep['k'])
    xp = cols.astype(jnp.bfloat16)
    if Mp != M or Kp != K:                     # pad only when actually needed
        xp = jnp.pad(xp, ((0, Mp - M), (0, Kp - K)))
    rp = None
    if residual is not None:
        rp = residual.astype(jnp.bfloat16)
        if Mp != M or Np != N:
            rp = jnp.pad(rp, ((0, Mp - M), (0, Np - N)))
    fn = _build_matmul(Mp, Kp, Np, tm, tn, tk, bool(relu), rp is not None, out_dtype)
    args = [xp, prep['w'], prep['sb']] + ([rp] if rp is not None else [])
    return fn(*args)[:M, :N]


# ----------------------------------------------------------------------------
# Fused global-average-pool + fc (1x1 conv) kernel
# ----------------------------------------------------------------------------
def _gap_fc_kernel(x_ref, w_ref, b_ref, o_ref, acc_ref, *, inv_hw):
    @pl.when(pl.program_id(0) == 0)
    def _():
        acc_ref[...] = jnp.zeros_like(acc_ref)

    acc_ref[...] += jnp.sum(x_ref[...].astype(jnp.float32), axis=1)

    @pl.when(pl.program_id(0) == pl.num_programs(0) - 1)
    def _():
        pooled = (acc_ref[...] * inv_hw).astype(jnp.bfloat16)
        o_ref[...] = (jnp.dot(pooled, w_ref[...],
                              preferred_element_type=jnp.float32) + b_ref[...])


def _gap_tile(HW):
    """Largest multiple-of-8 divisor of HW that is <= 512 (VMEM-safe pipelining)."""
    hi = min(HW, 512) // 8 * 8
    for th in range(hi, 7, -8):
        if HW % th == 0:
            return th
    return HW   # no suitable divisor: single block (tiny HW only)


@functools.lru_cache(maxsize=None)
def _build_gap_fc(NB, HW, C, NCP):
    th = _gap_tile(HW)
    kern = functools.partial(_gap_fc_kernel, inv_hw=1.0 / HW)
    return pl.pallas_call(
        kern,
        out_shape=jax.ShapeDtypeStruct((NB, NCP), jnp.float32),
        grid_spec=pltpu.PrefetchScalarGridSpec(
            num_scalar_prefetch=0,
            grid=(HW // th,),
            in_specs=[pl.BlockSpec((NB, th, C), lambda t: (0, t, 0)),
                      pl.BlockSpec((C, NCP), lambda t: (0, 0)),
                      pl.BlockSpec((1, NCP), lambda t: (0, 0))],
            out_specs=pl.BlockSpec((NB, NCP), lambda t: (0, 0)),
            scratch_shapes=[pltpu.VMEM((NB, C), jnp.float32)],
        ),
        compiler_params=pltpu.CompilerParams(
            dimension_semantics=("arbitrary",),
            vmem_limit_bytes=_tpu_caps()[2]),
    )


def gap_fc(x_nhwc, w, b, num_classes):
    N, H, W, C = x_nhwc.shape
    HW = H * W
    NB = _round_up(N, 8)
    xr = x_nhwc.reshape(N, HW, C)
    if NB != N:
        xr = jnp.pad(xr, ((0, NB - N), (0, 0), (0, 0)))
    out = _build_gap_fc(NB, HW, C, w.shape[1])(xr, w, b)
    return out[:N, :num_classes]


# ----------------------------------------------------------------------------
# Conv / pool / upsample wrappers (im2col glue in JAX, matmul in Pallas)
# ----------------------------------------------------------------------------
def conv_bn(x, prep, kh, kw, stride=1, padding=0, relu=True, residual=None):
    """x: NHWC bf16; prep: matmul-ready weight dict; optional fused residual add."""
    N, H, W, C = x.shape
    Kp = prep['w'].shape[0]
    if kh == 1 and kw == 1 and padding == 0:
        if stride != 1:
            x = x[:, ::stride, ::stride, :]
        Ho, Wo = x.shape[1], x.shape[2]
        cols = x.reshape(N * Ho * Wo, C)
    else:
        xpad = jnp.pad(x, ((0, 0), (padding, padding), (padding, padding), (0, 0)))
        Ho = (H + 2 * padding - kh) // stride + 1
        Wo = (W + 2 * padding - kw) // stride + 1
        patches = [xpad[:, i:i + stride * Ho:stride, j:j + stride * Wo:stride, :]
                   for i in range(kh) for j in range(kw)]
        K = kh * kw * C
        if Kp > K:
            # fold the K zero-padding into the same concatenate (one HBM copy)
            patches.append(jnp.zeros((N, Ho, Wo, Kp - K), x.dtype))
        cols = jnp.concatenate(patches, axis=-1).reshape(N * Ho * Wo, Kp)
    res2d = None
    if residual is not None:
        res2d = residual.reshape(N * Ho * Wo, prep['n'])
    out = matmul_prepped(cols, prep, relu=relu, residual=res2d)
    return out.reshape(N, Ho, Wo, prep['n'])


def maxpool_3x3_s2(x):
    """3x3 maxpool, stride 2, padding 1 (PyTorch semantics), fused jnp.maximum tree."""
    N, H, W, C = x.shape
    k, s, p = 3, 2, 1
    Ho = (H + 2 * p - k) // s + 1
    Wo = (W + 2 * p - k) // s + 1
    xpad = jnp.pad(x, ((0, 0), (p, p), (p, p), (0, 0)), constant_values=-jnp.inf)
    out = None
    for i in range(k):
        for j in range(k):
            win = xpad[:, i:i + s * Ho:s, j:j + s * Wo:s, :]
            out = win if out is None else jnp.maximum(out, win)
    return out


def _interp_gather(n_in, n_out):
    """align_corners=True source indices / lerp weights for n_in -> n_out."""
    if n_in == 1:
        z = jnp.zeros((n_out,), jnp.int32)
        return z, z, jnp.zeros((n_out,), jnp.float32)
    src = jnp.arange(n_out, dtype=jnp.float32) * (n_in - 1) / (n_out - 1)
    i0 = jnp.clip(jnp.floor(src).astype(jnp.int32), 0, n_in - 2)
    w = src - i0.astype(jnp.float32)
    return i0, i0 + 1, w


def upsample2x_bilinear(x):
    """F.interpolate(scale_factor=2, mode='bilinear', align_corners=True).

    Pure gather + lerp on the lane-dense NHWC layout (VPU work, f32 lerp):
    no transposes, no degenerate K-padded matmuls.
    """
    N, H, W, C = x.shape
    Ho, Wo = 2 * H, 2 * W
    h0, h1, hw = _interp_gather(H, Ho)
    w0, w1, ww = _interp_gather(W, Wo)
    hw = hw.reshape(1, Ho, 1, 1)
    y = jnp.take(x, h0, axis=1) * (1.0 - hw) + jnp.take(x, h1, axis=1) * hw
    ww = ww.reshape(1, 1, Wo, 1)
    y = jnp.take(y, w0, axis=2) * (1.0 - ww) + jnp.take(y, w1, axis=2) * ww
    return y.astype(x.dtype)


# ----------------------------------------------------------------------------
# Parameters (deterministic random, shapes from the PyTorch module), pre-prepped
# ----------------------------------------------------------------------------
class ParamGen:
    def __init__(self, seed=0):
        self.key = jax.random.PRNGKey(seed)
        self.count = 0

    def _next(self):
        self.count += 1
        return jax.random.fold_in(self.key, self.count)

    def conv(self, cout, cin, kh, kw):
        fan_in = cin * kh * kw
        return (jax.random.normal(self._next(), (cout, cin, kh, kw), jnp.float32)
                * jnp.sqrt(2.0 / fan_in))

    def bn(self, c, eps=1e-5):
        gamma = 1.0 + 0.1 * jax.random.normal(self._next(), (c,), jnp.float32)
        beta = 0.1 * jax.random.normal(self._next(), (c,), jnp.float32)
        running_mean = jnp.zeros((c,), jnp.float32)
        running_var = jnp.ones((c,), jnp.float32)
        scale = gamma / jnp.sqrt(running_var + eps)
        bias = beta - running_mean * scale
        return scale, bias


def _prep_conv(w4d, scale, bias):
    """Fold a PyTorch-layout conv weight + BN into a matmul-ready (bf16, padded) dict."""
    cout, cin, kh, kw = w4d.shape
    K, N = kh * kw * cin, cout
    wmat = jnp.transpose(w4d, (2, 3, 1, 0)).reshape(K, N)
    tk, tn = _pick_k(K), _pick_n(N)
    Kp, Np = _round_up(K, tk), _round_up(N, tn)
    sb = jnp.stack([scale.astype(jnp.float32), bias.astype(jnp.float32)], axis=0)
    return {
        'w': jnp.pad(wmat, ((0, Kp - K), (0, Np - N))).astype(jnp.bfloat16),
        'sb': jnp.pad(sb, ((0, 0), (0, Np - N))),     # merged (2, Np) scale/bias
        'k': K, 'n': N,
    }


def make_bottleneck(pg, inplanes, planes, downsample):
    p = {
        'c1': _prep_conv(pg.conv(planes, inplanes, 1, 1), *pg.bn(planes)),
        'c2': _prep_conv(pg.conv(planes, planes, 3, 3), *pg.bn(planes)),
        'c3': _prep_conv(pg.conv(planes * 4, planes, 1, 1), *pg.bn(planes * 4)),
    }
    if downsample:
        p['d'] = _prep_conv(pg.conv(planes * 4, inplanes, 1, 1), *pg.bn(planes * 4))
    return p


def make_layer(pg, inplanes, planes, blocks):
    layer = [make_bottleneck(pg, inplanes, planes, downsample=True)]
    for _ in range(blocks - 1):
        layer.append(make_bottleneck(pg, planes * 4, planes, downsample=False))
    return layer


def make_convmerge(pg, n, m):
    i1, i2, out_dim = n // 4, m // 4, m
    return {
        'layer_n': _prep_conv(pg.conv(i1, n, 1, 1), *pg.bn(i1)),
        'layer_m': _prep_conv(pg.conv(i2, m, 1, 1), *pg.bn(i2)),
        'layer_mn': _prep_conv(pg.conv(out_dim, i1 + i2, 1, 1), *pg.bn(out_dim)),
    }


def build_params(seed=0, num_classes=14):
    pg = ParamGen(seed)
    params = {
        'conv1': _prep_conv(pg.conv(64, 3, 7, 7), *pg.bn(64)),
        'layer1': make_layer(pg, 64, 64, 3),
        'layer2': make_layer(pg, 256, 128, 4),
        'layer3': make_layer(pg, 512, 256, 6),
        'layer4': make_layer(pg, 1024, 512, 3),
        'rc43': make_convmerge(pg, 2048, 1024),
        'rc32': make_convmerge(pg, 1024, 512),
    }
    ncp = _round_up(num_classes, 128)
    wfc = pg.conv(num_classes, 512, 1, 1).reshape(num_classes, 512).T   # (512, 14)
    bfc = 0.1 * jax.random.normal(pg._next(), (num_classes,), jnp.float32)
    params['fc_w'] = jnp.pad(wfc, ((0, 0), (0, ncp - num_classes))).astype(jnp.bfloat16)
    params['fc_b'] = jnp.pad(bfc, (0, ncp - num_classes)).reshape(1, ncp)
    return params


# ----------------------------------------------------------------------------
# Forward pass
# ----------------------------------------------------------------------------
def bottleneck_fwd(x, p, stride):
    if 'd' in p:
        shortcut = conv_bn(x, p['d'], 1, 1, stride=stride, relu=False)
    else:
        shortcut = x
    out = conv_bn(x, p['c1'], 1, 1, relu=True)
    out = conv_bn(out, p['c2'], 3, 3, stride=stride, padding=1, relu=True)
    # residual add + ReLU fused into the conv3 matmul epilogue
    out = conv_bn(out, p['c3'], 1, 1, relu=True, residual=shortcut)
    return out


def run_layer(x, blocks, stride):
    x = bottleneck_fwd(x, blocks[0], stride)
    for p in blocks[1:]:
        x = bottleneck_fwd(x, p, 1)
    return x


def convmerge_fwd(nfeat, mfeat, p):
    m = conv_bn(mfeat, p['layer_m'], 1, 1, relu=True)
    n = conv_bn(nfeat, p['layer_n'], 1, 1, relu=True)
    n = upsample2x_bilinear(n)
    cat = jnp.concatenate([n, m], axis=-1)       # channel concat (dim=1 in NCHW)
    return conv_bn(cat, p['layer_mn'], 1, 1, relu=True)


def resnet50_ms_forward(x_nchw, params, num_classes=14):
    x = jnp.transpose(x_nchw, (0, 2, 3, 1)).astype(jnp.bfloat16)   # NCHW -> NHWC bf16
    # stem
    x = conv_bn(x, params['conv1'], 7, 7, stride=2, padding=3, relu=True)
    x = maxpool_3x3_s2(x)
    # stages
    x1 = run_layer(x, params['layer1'], 1)
    x2 = run_layer(x1, params['layer2'], 2)
    x3 = run_layer(x2, params['layer3'], 2)
    x4 = run_layer(x3, params['layer4'], 2)
    # multi-scale merges
    xp = convmerge_fwd(x4, x3, params['rc43'])
    xp = convmerge_fwd(xp, x2, params['rc32'])
    # fused GAP + fc (Conv2d(512, num_classes, 1) with bias) + preds[:, :14]
    preds = gap_fc(xp, params['fc_w'], params['fc_b'], num_classes)
    return preds[:, :14]


if __name__ == "__main__":
    key = jax.random.PRNGKey(0)
    # Small input consistent with the module: NCHW, 3 channels, spatial 64
    # (H, W must be multiples of 32 for the multi-scale merges to line up).
    x = jax.random.normal(key, (2, 3, 64, 64), jnp.float32)
    params = build_params(seed=0, num_classes=14)
    out = resnet50_ms_forward(x, params)
    out = jax.block_until_ready(out)
    assert out.shape == (2, 14), out.shape
    assert bool(jnp.all(jnp.isfinite(out)))
    print("KERNEL_OK")
</pallas_src>

<mosaic_0001>
module attributes {stable_mosaic.version = 11 : i64} {
  func.func @_mm_kernel(%arg0: i32, %arg1: i32, %arg2: i32, %arg3: memref<256x256xbf16, #tpu.memory_space<vmem>>, %arg4: memref<256x128xbf16, #tpu.memory_space<vmem>>, %arg5: memref<2x128xf32, #tpu.memory_space<vmem>>, %arg6: memref<256x128xbf16, #tpu.memory_space<vmem>>, %arg7: memref<256x128xf32, #tpu.memory_space<vmem>>) attributes {dimension_semantics = [#tpu.dimension_semantics<parallel>, #tpu.dimension_semantics<parallel>, #tpu.dimension_semantics<arbitrary>], iteration_bounds = array<i64: 8, 1, 1>, scalar_prefetch = 0 : i64, scratch_operands = 1 : i64, tpu.core_type = #tpu.core_type<tc>, window_params = [{transform_indices = @transform_0, window_bounds = array<i64: 256, 256>}, {transform_indices = @transform_1, window_bounds = array<i64: 256, 128>}, {transform_indices = @transform_2, window_bounds = array<i64: 2, 128>}, {transform_indices = @transform_3, window_bounds = array<i64: 256, 128>}]} {
    %c0_i32 = arith.constant 0 : i32
    %0 = arith.cmpi eq, %arg2, %c0_i32 : i32
    %1 = arith.extui %0 : i1 to i32
    %c0_i32_0 = arith.constant 0 : i32
    %2 = arith.cmpi ne, %1, %c0_i32_0 : i32
    scf.if %2 {
      %cst_10 = arith.constant 0.000000e+00 : f32
      %12 = vector.broadcast %cst_10 : f32 to vector<256x128xf32>
      %c0_11 = arith.constant 0 : index
      %c0_12 = arith.constant 0 : index
      %13 = vector.load %arg7[%c0_11, %c0_12] : memref<256x128xf32, #tpu.memory_space<vmem>>, vector<256x128xf32>
      tpu.vector_store %arg7[%c0_11, %c0_12], %12 {strides = array<i32>} : memref<256x128xf32, #tpu.memory_space<vmem>>, vector<256x128xf32>,
    } else {
    }
    %c0 = arith.constant 0 : index
    %c0_1 = arith.constant 0 : index
    %3 = vector.load %arg7[%c0, %c0_1] : memref<256x128xf32, #tpu.memory_space<vmem>>, vector<256x128xf32>
    %c0_2 = arith.constant 0 : index
    %c0_3 = arith.constant 0 : index
    %4 = vector.load %arg3[%c0_2, %c0_3] : memref<256x256xbf16, #tpu.memory_space<vmem>>, vector<256x256xbf16>
    %c0_4 = arith.constant 0 : index
    %c0_5 = arith.constant 0 : index
    %5 = vector.load %arg4[%c0_4, %c0_5] : memref<256x128xbf16, #tpu.memory_space<vmem>>, vector<256x128xbf16>
    %cst = arith.constant dense<0.000000e+00> : vector<256x128xf32>
    %6 = tpu.matmul %4, %5, %cst {dimension_numbers = #tpu.dot_dimension_numbers<[1], [0], [0], [1], [0, 0, 1, 1], [], []>} : vector<256x256xbf16>, vector<256x128xbf16>, vector<256x128xf32> -> vector<256x128xf32>
    %7 = arith.addf %3, %6 : vector<256x128xf32>
    %c0_6 = arith.constant 0 : index
    %c0_7 = arith.constant 0 : index
    %8 = vector.load %arg7[%c0_6, %c0_7] : memref<256x128xf32, #tpu.memory_space<vmem>>, vector<256x128xf32>
    tpu.vector_store %arg7[%c0_6, %c0_7], %7 {strides = array<i32>} : memref<256x128xf32, #tpu.memory_space<vmem>>, vector<256x128xf32>,
    %c0_i32_8 = arith.constant 0 : i32
    %9 = arith.cmpi eq, %arg2, %c0_i32_8 : i32
    %10 = arith.extui %9 : i1 to i32
    %c0_i32_9 = arith.constant 0 : i32
    %11 = arith.cmpi ne, %10, %c0_i32_9 : i32
    scf.if %11 {
      %c0_10 = arith.constant 0 : index
      %c0_11 = arith.constant 0 : index
      %12 = vector.load %arg7[%c0_10, %c0_11] : memref<256x128xf32, #tpu.memory_space<vmem>>, vector<256x128xf32>
      %c0_12 = arith.constant 0 : index
      %c0_13 = arith.constant 0 : index
      %13 = vector.load %arg5[%c0_12, %c0_13] : memref<2x128xf32, #tpu.memory_space<vmem>>, vector<1x128xf32>
      %14 = vector.broadcast %13 : vector<1x128xf32> to vector<256x128xf32>
      %15 = arith.mulf %12, %14 : vector<256x128xf32>
      %c1 = arith.constant 1 : index
      %c0_14 = arith.constant 0 : index
      %16 = vector.load %arg5[%c1, %c0_14] : memref<2x128xf32, #tpu.memory_space<vmem>>, vector<1x128xf32>
      %17 = vector.broadcast %16 : vector<1x128xf32> to vector<256x128xf32>
      %18 = arith.addf %15, %17 : vector<256x128xf32>
      %cst_15 = arith.constant 0.000000e+00 : f32
      %19 = vector.broadcast %cst_15 : f32 to vector<256x128xf32>
      %20 = arith.maximumf %18, %19 : vector<256x128xf32>
      %21 = arith.truncf %20 : vector<256x128xf32> to vector<256x128xbf16>
      %c0_16 = arith.constant 0 : index
      %c0_17 = arith.constant 0 : index
      %22 = vector.load %arg6[%c0_16, %c0_17] : memref<256x128xbf16, #tpu.memory_space<vmem>>, vector<256x128xbf16>
      tpu.vector_store %arg6[%c0_16, %c0_17], %21 {strides = array<i32>} : memref<256x128xbf16, #tpu.memory_space<vmem>>, vector<256x128xbf16>,
    } else {
    }
    return
  }
  func.func @transform_0(%arg0: i32, %arg1: i32, %arg2: i32) -> (i32, i32) {
    %c0_i32 = arith.constant 0 : i32
    return %arg0, %arg2 : i32, i32
  }
  func.func @transform_1(%arg0: i32, %arg1: i32, %arg2: i32) -> (i32, i32) {
    %c0_i32 = arith.constant 0 : i32
    return %arg2, %arg1 : i32, i32
  }
  func.func @transform_2(%arg0: i32, %arg1: i32, %arg2: i32) -> (i32, i32) {
    %c0_i32 = arith.constant 0 : i32
    %c0_i32_0 = arith.constant 0 : i32
    return %c0_i32, %arg1 : i32, i32
  }
  func.func @transform_3(%arg0: i32, %arg1: i32, %arg2: i32) -> (i32, i32) {
    %c0_i32 = arith.constant 0 : i32
    return %arg0, %arg1 : i32, i32
  }
}

</mosaic_0001>

<bundles_post_ra>
// kernel: tpu_custom_call.1
= control target key start
LH: loop header
LB: loop body
LE: loop exit
PB: predicated region body
PF: predicated region fallthrough
CT: control target
= control target key end

     0   :  { %8 = vsyncpa [#allocation4], 0  ;;  %s2288_s0 = inlined_call_operand.hbm [shape: bf16[2048,256], index: 0, kind: input, shape index: {}]   ;;  %s2289_s1 = inlined_call_operand.hbm [shape: bf16[256,128], index: 1, kind: input, shape index: {}]   ;;  %s2290_s2 = inlined_call_operand.vmem [shape: f32[2,128], index: 2, kind: input, shape index: {}]   ;;  %s2291_s3 = inlined_call_operand.hbm [shape: bf16[2048,128], index: 3, kind: output, shape index: {}]  }
   0x1   :  { %10 = vsyncpa [#allocation4 + $0x1], 0 }
   0x2   :  { %11 = vsyncpa [#allocation7], 0 }
   0x3   :  { %12 = vsyncpa [#allocation5], 0 }
   0x4   :  { %14 = vsyncpa [#allocation5 + $0x1], 0  ;;  %s1981_s12 = smov 0   ;;  %s1983_s13 = smov 0  }
   0x5   :  { %s1985_s14 = smov 0   ;;  %s1987_s15 = smov 0  }
   0x6   :  { %s1989_s16 = smov 0   ;;  %s1991_s17 = smov 0  }
   0x7 LB: > { %s1310_s18 = sadd.s32 4294967295, %s1950_s17   ;;  %s1311_s19 = sadd.s32 4294967294, %s1950_s17   ;;  %s1950_s17 = sphi %s1991_s17, %s20_s17   ;;  %s1946_s16 = sphi %s1989_s16, %s2308_s16   ;;  %s1942_s15 = sphi %s1987_s15, %s2307_s15   ;;  %s1938_s14 = sphi %s1985_s14, %s2306_s14   ;;  %s1934_s13 = sphi %s1983_s13, %s2305_s13   ;;  %s1930_s12 = sphi %s1981_s12, %s2304_s12  }
   0x8   : > { %p61_p0 = scmp.ne.s32.totalorder %s1934_s13, %s1930_s12  ;;  %p2015_p1 = scmp.eq.s32.totalorder %s1310_s18, 0 }
   0x9   : > { %p2019_p2 = scmp.eq.s32.totalorder %s1310_s18, 7  ;;  %p147_p3 = scmp.eq.s32.totalorder %s1311_s19, 7 }
   0xa   : > { %p2025_p4 = por %p2015_p1, %p61_p0  ;;  %p1312_p5 = scmp.ge.s32.totalorder %s1950_s17, 1 }
   0xb   : > { %p2030_p6 = por %p147_p3, %p61_p0  ;;  %p154_p7 = scmp.lt.s32.totalorder %s1950_s17, 9 }
   0xc   : > { %s1952_s25 = smov [#allocation6]   ;;  %s39_s28 = sadd.s32 1, %s1946_s16 }
   0xd   : > { %s2296_s23 = scalar_select %p2030_p6, 1, 0 }
   0xe   : > { %p2035_p8 = pnand %p1312_p5, %p154_p7  ;;  %s170_s26 = sshll.u32 %s1952_s25, 4  ;;  %s171_s26 = int_to_ptr.vmem [resolvable:$true] %s170_s26 }
   0xf   : > { %s1823_s29 = scalar_lea.vmem %s171_s26, 2048  ;;  %p1831_p3 = scmp.lt.s32.totalorder %s171_s26, %s171_s26 }
  0x10   : > { %p1677_p9 = pneg %p2035_p8  ;;  %p1824_p12 = scmp.ne.s32.totalorder %s171_s26, %s1823_s29 }
  0x11   : > { %p1832_p5 = scmp.lt.s32.totalorder %s1823_s29, %s1823_s29 }
  0x12   : > { %p2043_p10 = pnand %p1677_p9, %p2015_p1 }
  0x13   : > { %p1833_p7 = por %p1832_p5, %p1831_p3 }
  0x14   : > { %p1814_p11 = pneg %p2043_p10 }
  0x16   : > { %p1826_p13 = pnand %p1824_p12, %p1814_p11 }
  0x18   : > { %p1827_p0 = pneg %p1826_p13 }
  0x1a   : > { %p1834_p6 = pnand %p1833_p7, %p1827_p0 }
  0x1c   : > { %1837 = shalt.err (!%p1834_p6)
}
  0x1d   : > { %s1953_s30 = smov 64   ;;  %s1954_s4 = smov 4  }
  0x1e   : > { %1680 = dma.hbm_to_vmem [thread:$0]  (!%p2043_p10), %s2289_s1, 2048, %s171_s26, [#allocation7], %s1953_s30, %s1953_s30, %s1954_s4  }
  0x1f   : > { %p41_p9 = scmp.ge.s32.totalorder %s39_s28, 8  ;;  %s48_s7 = sadd.s32 1, %s1938_s14 }
  0x20   : > { %p55_p6 = scmp.ne.s32.totalorder %s1938_s14, %s1934_s13  ;;  %p56_p11 = scmp.eq.s32.totalorder %s1950_s17, 0 }
  0x21   : > { %s2310_s28 = smov (%p41_p9, %s39_s28), 0  ;;  %p1690_p0 = scmp.lt.s32.totalorder %s1950_s17, 8 }
  0x22   : > { %p2061_p12 = por %p56_p11, %p55_p6  ;;  %p2067_p13 = por %p2019_p2, %p55_p6 }
  0x23   : > { %s43_s10 = ssub.s32 %s1946_s16, %s2310_s28  ;;  %s191_s11 = sand.u32 1, %s1938_s14  }
  0x24   : > { %s2300_s9 = scalar_select %p2067_p13, 1, 0 }
  0x25   : > { %p46_p10 = scmp.eq.s32.totalorder %s43_s10, 0  ;;  %s1316_s18 = sshll.u32 %s191_s11, 8 }
  0x26   : > { %s1412_s25 = sshll.u32 %s1946_s16, 12  ;;  %s195_s30 = scalar_lea.vmem [#allocation3], %s1316_s18 }
  0x27   : > { %s2076_s19 = scalar_select %p46_p10, %s1938_s14, %s48_s7  }
  0x28   : > { %s204_s29 = scalar_lea.hbm %s2288_s0, %s1412_s25  ;;  %s205_s4 = sshll.u32 %s195_s30, 4  ;;  %s206_s4 = int_to_ptr.vmem [resolvable:$true] %s205_s4 }
  0x29   : > { %p2084_p2 = pnand %p1690_p0, %p2061_p12  ;;  %s192_s5 = scalar_lea.sflag [#allocation4], %s191_s11 }
  0x2a   : > { %s1851_s6 = scalar_lea.vmem %s206_s4, 4096  ;;  %s1955_s7 = smov [#allocation3]  }
  0x2b   : > { %p1840_p3 = pneg %p2084_p2  ;;  %p1852_p5 = scmp.ne.s32.totalorder %s206_s4, %s1851_s6 }
  0x2c   : > { %s1856_s10 = sshll.u32 %s1955_s7, 4  ;;  %s1857_s10 = int_to_ptr.vmem [resolvable:$false] %s1856_s10 }
  0x2d   : > { %p1854_p7 = pnand %p1852_p5, %p1840_p3  ;;  %s1858_s25 = scalar_lea.vmem %s1857_s10, 8192 }
  0x2e   : > { %p1859_p6 = scmp.lt.s32.totalorder %s206_s4, %s1857_s10  ;;  %p1860_p11 = scmp.lt.s32.totalorder %s1858_s25, %s1851_s6 }
  0x2f   : > { %p1855_p9 = pneg %p1854_p7 }
  0x30   : > { %p1861_p10 = por %p1860_p11, %p1859_p6 }
  0x32   : > { %p1862_p13 = pnand %p1861_p10, %p1855_p9 }
  0x34   : > { %1865 = shalt.err (!%p1862_p13)
}
  0x35   : > { %s1956_s8 = smov 128   ;;  %s1957_s18 = smov 8  }
  0x36   : > { %1684 = dma.hbm_to_vmem [thread:$0]  (!%p2084_p2), %s204_s29, 4096, %s206_s4, %s192_s5, %s1956_s8, %s1956_s8, %s1957_s18  }
  0x37   : > { %217 = sbr.rel (%p2035_p8) target bundleno = 375 (0x177), region = 32  ;;  %s2095_s11 = sand.u32 (!%p2035_p8), 1, %s1934_s13  }
  0x38   : > { %s1321_s26 = sshll.u32 (!%p2035_p8), %s2095_s11, 8  ;;  %s220_s27 = scalar_lea.sflag (!%p2035_p8), [#allocation4], %s2095_s11 }
  0x39   : > { %s2099_s30 = scalar_lea.vmem (!%p2035_p8), [#allocation3], %s1321_s26 }
  0x3c   : > { %1917 = dma.done.wait (%p2025_p4), %s220_s27, 4096  }
  0x3d   : > { %1919 = vsyncadd (%p2025_p4), %s220_s27, 4294963200 }
  0x3e   : > { %1921 = dma.done.wait (%p2015_p1), [#allocation7], 2048  }
  0x3f   : > { %1923 = vsyncadd (%p2015_p1), [#allocation7], 4294965248  ;;  %v1748_v0 = vld [vmem:[#allocation6 + $0x78] sm:$0xff]   ;;  %v1750_v2 = vld [vmem:[#allocation6 + $0x70] sm:$0xff]   ;;  %s1323_s4 = sshll.u32 %s2095_s11, 7  ;;  %s1445_s5 = sshll.u32 %s1942_s15, 11 }
  0x40   : > { %v1749_v1 = vld [vmem:[#allocation6 + $0x38] sm:$0xff]   ;;  %1541 = vmatprep.subr.bf16.mxu0 %v1748_v0  ;;  %1653 = vmatprep.subr.bf16.mxu1 %v1748_v0  ;;  %v1751_v3 = vld [vmem:[#allocation6 + $0x30] sm:$0xff]   ;;  %v1752_v4 = vld [vmem:[#allocation6 + $0x68] sm:$0xff]   ;;  %s2162_s21 = scalar_lea.vmem [#allocation8], %s1323_s4  ;;  %s2237_s25 = scalar_lea.hbm %s2291_s3, %s1445_s5 }
  0x41   : > { %1542 = vmatpush3.bf16.msra.mxu0 %v1749_v1  ;;  %1661 = vmatpush3.bf16.msra.mxu1 %v1749_v1  ;;  %v1753_v5 = vld [vmem:[#allocation6 + $0x28] sm:$0xff]   ;;  %v1754_v6 = vld [vmem:[#allocation6 + $0x60] sm:$0xff]   ;;  %v1756_v8 = vld [vmem:[#allocation6 + $0x58] sm:$0xff]   ;;  %s1192_s6 = sshll.u32 %s2162_s21, 4  ;;  %s1178_s15 = scalar_lea.sflag [#allocation5], %s2095_s11  ;;  %s2239_s6 = int_to_ptr.vmem [resolvable:$true] %s1192_s6 }
  0x42   : > { %1543 = vmatprep.subr.bf16.mxu0 %v1750_v2  ;;  %1654 = vmatprep.subr.bf16.mxu1 %v1750_v2  ;;  %v1755_v7 = vld [vmem:[#allocation6 + $0x20] sm:$0xff]   ;;  %v1757_v9 = vld [vmem:[#allocation6 + $0x18] sm:$0xff]   ;;  %v1758_v10 = vld [vmem:[#allocation6 + $0x50] sm:$0xff]   ;;  %s1866_s8 = scalar_lea.vmem %s2239_s6, 2048  ;;  %p2302_p4 = scmp.ne.s32.totalorder %s2300_s9, 0 }
  0x43   : > { %v1766_v11 = vld [vmem:[%s2099_s30 + $0x4] ss:$8 sps:$4 sm:$0xff]   ;;  %v1759_v13 = vld [vmem:[#allocation6 + $0x10] sm:$0xff]   ;;  %v1764_v18 = vld [vmem:[%s2099_s30] ss:$8 sps:$4 sm:$0xff]   ;;  %p1867_p1 = scmp.ne.s32.totalorder %s2239_s6, %s1866_s8  ;;  %s1958_s18 = smov [#allocation8]  }
  0x44   : > { %v1769_v12 = vld [vmem:[%s2099_s30 + $0x84] ss:$8 sps:$4 sm:$0xff]   ;;  %683 = vmatprep.mubr.bf16.mxu0 %v1766_v11  ;;  %v1767_v19 = vld [vmem:[%s2099_s30 + $0x80] ss:$8 sps:$4 sm:$0xff]   ;;  %v1770_v20 = vld [vmem:[%s2099_s30 + $0x14] ss:$8 sps:$4 sm:$0xff]  }
  0x45   : > { %1544 = vmatpush3.bf16.msra.mxu0 %v1751_v3  ;;  %1662 = vmatpush3.bf16.msra.mxu1 %v1751_v3  ;;  %v1760_v14 = vld [vmem:[#allocation6 + $0x48] sm:$0xff]   ;;  %v1762_v16 = vld [vmem:[#allocation6 + $0x40] sm:$0xff]   ;;  %v1772_v21 = vld [vmem:[%s2099_s30 + $0x94] ss:$8 sps:$4 sm:$0xff]   ;;  %p1868_p8 = pnand %p1867_p1, %p2302_p4  ;;  %s1870_s26 = sshll.u32 %s1958_s18, 4  ;;  %s1871_s26 = int_to_ptr.vmem [resolvable:$false] %s1870_s26 }
  0x46   : > { %1545 = vmatprep.subr.bf16.mxu0 %v1752_v4  ;;  %1655 = vmatprep.subr.bf16.mxu1 %v1752_v4  ;;  %v1761_v15 = vld [vmem:[#allocation6 + $0x8] sm:$0xff]   ;;  %v1763_v17 = vld [vmem:[#allocation6] sm:$0xff]   ;;  %v1774_v22 = vld [vmem:[%s2099_s30 + $0x10] ss:$8 sps:$4 sm:$0xff]   ;;  %s1872_s27 = scalar_lea.vmem %s1871_s26, 4096  ;;  %p1873_p13 = scmp.lt.s32.totalorder %s2239_s6, %s1871_s26 }
  0x47   : > { %747 = vmatprep.mubr.bf16.mxu1 %v1769_v12  ;;  %v1775_v23 = vld [vmem:[%s2099_s30 + $0x90] ss:$8 sps:$4 sm:$0xff]   ;;  %v1776_v24 = vld [vmem:[%s2099_s30 + $0x24] ss:$8 sps:$4 sm:$0xff]   ;;  %v1780_v26 = vld [vmem:[%s2099_s30 + $0x20] ss:$8 sps:$4 sm:$0xff]   ;;  %p1869_p12 = pneg %p1868_p8  ;;  %p1874_p0 = scmp.lt.s32.totalorder %s1872_s27, %s1866_s8 }
  0x48   : > { %v1778_v25 = vld [vmem:[%s2099_s30 + $0xa4] ss:$8 sps:$4 sm:$0xff]   ;;  %v1781_v27 = vld [vmem:[%s2099_s30 + $0xa0] ss:$8 sps:$4 sm:$0xff]   ;;  %v1782_v28 = vld [vmem:[%s2099_s30 + $0x34] ss:$8 sps:$4 sm:$0xff]  }
  0x49   : > { %1546 = vmatpush3.bf16.msra.mxu0 %v1753_v5  ;;  %1663 = vmatpush3.bf16.msra.mxu1 %v1753_v5  ;;  %v1784_v29 = vld [vmem:[%s2099_s30 + $0xb4] ss:$8 sps:$4 sm:$0xff]   ;;  %v1786_v30 = vld [vmem:[%s2099_s30 + $0x30] ss:$8 sps:$4 sm:$0xff]   ;;  %v1788_v32 = vld [vmem:[%s2099_s30 + $0x44] ss:$8 sps:$4 sm:$0xff]   ;;  %p1875_p2 = por %p1874_p0, %p1873_p13 }
  0x4a   : > { %1547 = vmatprep.subr.bf16.mxu0 %v1754_v6  ;;  %1656 = vmatprep.subr.bf16.mxu1 %v1754_v6  ;;  %v1787_v31 = vld [vmem:[%s2099_s30 + $0xb0] ss:$8 sps:$4 sm:$0xff]   ;;  %v1790_v33 = vld [vmem:[%s2099_s30 + $0xc4] ss:$8 sps:$4 sm:$0xff]   ;;  %v1792_v34 = vld [vmem:[%s2099_s30 + $0x40] ss:$8 sps:$4 sm:$0xff]  }
  0x4b   : > { %v1793_v35 = vld [vmem:[%s2099_s30 + $0xc0] ss:$8 sps:$4 sm:$0xff]   ;;  %v1794_v36 = vld [vmem:[%s2099_s30 + $0x54] ss:$8 sps:$4 sm:$0xff]   ;;  %v1798_v38 = vld [vmem:[%s2099_s30 + $0x50] ss:$8 sps:$4 sm:$0xff]   ;;  %p1876_p3 = pnand %p1875_p2, %p1869_p12 }
  0x4c   : > { %v1796_v37 = vld [vmem:[%s2099_s30 + $0xd4] ss:$8 sps:$4 sm:$0xff]   ;;  %v1799_v39 = vld [vmem:[%s2099_s30 + $0xd0] ss:$8 sps:$4 sm:$0xff]   ;;  %v1800_v40 = vld [vmem:[%s2099_s30 + $0x64] ss:$8 sps:$4 sm:$0xff]  }
  0x4d   : > { %1548 = vmatpush3.bf16.msra.mxu0 %v1755_v7  ;;  %1664 = vmatpush3.bf16.msra.mxu1 %v1755_v7  ;;  %v1802_v41 = vld [vmem:[%s2099_s30 + $0xe4] ss:$8 sps:$4 sm:$0xff]   ;;  %v1804_v42 = vld [vmem:[%s2099_s30 + $0x60] ss:$8 sps:$4 sm:$0xff]   ;;  %v1806_v44 = vld [vmem:[%s2099_s30 + $0x74] ss:$8 sps:$4 sm:$0xff]  }
  0x4e   : > { %1549 = vmatprep.subr.bf16.mxu0 %v1756_v8  ;;  %1657 = vmatprep.subr.bf16.mxu1 %v1756_v8  ;;  %v1805_v43 = vld [vmem:[%s2099_s30 + $0xe0] ss:$8 sps:$4 sm:$0xff]   ;;  %v1808_v45 = vld [vmem:[%s2099_s30 + $0xf4] ss:$8 sps:$4 sm:$0xff]   ;;  %v1810_v46 = vld [vmem:[%s2099_s30 + $0x70] ss:$8 sps:$4 sm:$0xff]  }
  0x4f   : > { %v1811_v47 = vld [vmem:[%s2099_s30 + $0xf0] ss:$8 sps:$4 sm:$0xff]   ;;  %v2144_v51 = vld [vmem:[%s2290_s2] ss:$0 sm:$0xff]  ;;  %v2151_v59 = vld [vmem:[%s2290_s2 + $0x1] ss:$0 sm:$0xff] }
  0x51   : > { %1550 = vmatpush3.bf16.msra.mxu0 %v1757_v9  ;;  %1665 = vmatpush3.bf16.msra.mxu1 %v1757_v9 }
  0x52   : > { %1551 = vmatprep.subr.bf16.mxu0 %v1758_v10  ;;  %1658 = vmatprep.subr.bf16.mxu1 %v1758_v10 }
  0x55   : > { %1552 = vmatpush3.bf16.msra.mxu0 %v1759_v13  ;;  %1666 = vmatpush3.bf16.msra.mxu1 %v1759_v13 }
  0x56   : > { %1553 = vmatprep.subr.bf16.mxu0 %v1760_v14  ;;  %1659 = vmatprep.subr.bf16.mxu1 %v1760_v14 }
  0x59   : > { %1554 = vmatpush3.bf16.msra.mxu0 %v1761_v15  ;;  %1667 = vmatpush3.bf16.msra.mxu1 %v1761_v15 }
  0x5a   : > { %1555 = vmatprep.subr.bf16.mxu0 %v1762_v16  ;;  %1660 = vmatprep.subr.bf16.mxu1 %v1762_v16 }
  0x5d   : > { %1556 = vmatpush3.bf16.msra.mxu0 %v1763_v17  ;;  %1668 = vmatpush3.bf16.msra.mxu1 %v1763_v17 }
  0x60   : > { %684 = vmatmul.mubr.bf16.vlgmr.msra.gmra.mxu0 %v1764_v18  ;;  %748 = vmatmul.mubr.bf16.vlgmr.msra.gmra.mxu1 %v1767_v19 }
  0x61   : > { %691 = vmatprep.mubr.bf16.mxu0 %v1770_v20  ;;  %755 = vmatprep.mubr.bf16.mxu1 %v1772_v21 }
  0x68   : > { %692 = vmatmul.mubr.bf16.gmra.mxu0 %v1774_v22  ;;  %756 = vmatmul.mubr.bf16.gmra.mxu1 %v1775_v23 }
  0x69   : > { %699 = vmatprep.mubr.bf16.mxu0 %v1776_v24  ;;  %763 = vmatprep.mubr.bf16.mxu1 %v1778_v25 }
  0x70   : > { %700 = vmatmul.mubr.bf16.gmra.mxu0 %v1780_v26  ;;  %764 = vmatmul.mubr.bf16.gmra.mxu1 %v1781_v27 }
  0x71   : > { %707 = vmatprep.mubr.bf16.mxu0 %v1782_v28  ;;  %771 = vmatprep.mubr.bf16.mxu1 %v1784_v29 }
  0x78   : > { %708 = vmatmul.mubr.bf16.gmra.mxu0 %v1786_v30  ;;  %772 = vmatmul.mubr.bf16.gmra.mxu1 %v1787_v31 }
  0x79   : > { %715 = vmatprep.mubr.bf16.mxu0 %v1788_v32  ;;  %779 = vmatprep.mubr.bf16.mxu1 %v1790_v33 }
  0x80   : > { %716 = vmatmul.mubr.bf16.gmra.mxu0 %v1792_v34  ;;  %780 = vmatmul.mubr.bf16.gmra.mxu1 %v1793_v35 }
  0x81   : > { %723 = vmatprep.mubr.bf16.mxu0 %v1794_v36  ;;  %787 = vmatprep.mubr.bf16.mxu1 %v1796_v37 }
  0x88   : > { %724 = vmatmul.mubr.bf16.gmra.mxu0 %v1798_v38  ;;  %788 = vmatmul.mubr.bf16.gmra.mxu1 %v1799_v39 }
  0x89   : > { %731 = vmatprep.mubr.bf16.mxu0 %v1800_v40  ;;  %795 = vmatprep.mubr.bf16.mxu1 %v1802_v41 }
  0x90   : > { %732 = vmatmul.mubr.bf16.gmra.mxu0 %v1804_v42  ;;  %796 = vmatmul.mubr.bf16.gmra.mxu1 %v1805_v43 }
  0x91   : > { %739 = vmatprep.mubr.bf16.mxu0 %v1806_v44  ;;  %803 = vmatprep.mubr.bf16.mxu1 %v1808_v45 }
  0x98   : > { %740 = vmatmul.mubr.bf16.gmra.mxu0 %v1810_v46  ;;  %804 = vmatmul.mubr.bf16.gmra.mxu1 %v1811_v47 }
 0x120   : > { %v1557_v48 = vpop.f32.mrf.mxu0  ;;  %v1605_v49 = vpop.f32.mrf.mxu1 }
 0x122   : > { %v1558_v50 = vpop.f32.mrf.mxu0  ;;  %v1606_v52 = vpop.f32.mrf.mxu1 }
 0x123   : > { %v1559_v53 = vadd.f32 %v1558_v50, %v1557_v48  ;;  %v1607_v54 = vadd.f32 %v1606_v52, %v1605_v49 }
 0x124   : > { %v1560_v55 = vpop.f32.mrf.mxu0  ;;  %v1608_v56 = vpop.f32.mrf.mxu1 }
 0x125   : > { %v916_v57 = vmul.f32 %v1559_v53, %v2144_v51  ;;  %v932_v58 = vmul.f32 %v1607_v54, %v2144_v51 }
 0x126   : > { %v1561_v60 = vpop.f32.mrf.mxu0  ;;  %v1609_v61 = vpop.f32.mrf.mxu1 }
 0x127   : > { %v1562_v62 = vadd.f32 %v1561_v60, %v1560_v55  ;;  %v1610_v63 = vadd.f32 %v1609_v61, %v1608_v56  ;;  %v953_v2 = vadd.f32 %v2151_v59, %v916_v57  ;;  %v969_v3 = vadd.f32 %v2151_v59, %v932_v58 }
 0x128   : > { %v1563_v0 = vpop.f32.mrf.mxu0  ;;  %v1611_v1 = vpop.f32.mrf.mxu1 }
 0x129   : > { %v917_v4 = vmul.f32 %v1562_v62, %v2144_v51  ;;  %v933_v5 = vmul.f32 %v1610_v63, %v2144_v51  ;;  %v985_v14 = vmax.f32 %v953_v2, 0.0  ;;  %v1001_v15 = vmax.f32 %v969_v3, 0.0 }
 0x12a   : > { %v1564_v6 = vpop.f32.mrf.mxu0  ;;  %v1612_v7 = vpop.f32.mrf.mxu1 }
 0x12b   : > { %v954_v8 = vadd.f32 %v2151_v59, %v917_v4  ;;  %v970_v9 = vadd.f32 %v2151_v59, %v933_v5  ;;  %v1565_v10 = vadd.f32 %v1564_v6, %v1563_v0  ;;  %v1613_v11 = vadd.f32 %v1612_v7, %v1611_v1 }
 0x12c   : > { %v1566_v12 = vpop.f32.mrf.mxu0  ;;  %v1614_v13 = vpop.f32.mrf.mxu1 }
 0x12d   : > { %v986_v16 = vmax.f32 %v954_v8, 0.0  ;;  %v1002_v17 = vmax.f32 %v970_v9, 0.0  ;;  %v918_v18 = vmul.f32 %v1565_v10, %v2144_v51  ;;  %v934_v19 = vmul.f32 %v1613_v11, %v2144_v51 }
 0x12e   : > { %v1567_v20 = vpop.f32.mrf.mxu0  ;;  %v1615_v21 = vpop.f32.mrf.mxu1 }
 0x12f   : > { %v1449_v22 = vpack.c.bf16 %v986_v16, %v985_v14  ;;  %v1489_v23 = vpack.c.bf16 %v1002_v17, %v1001_v15  ;;  %v1568_v24 = vadd.f32 %v1567_v20, %v1566_v12  ;;  %v1616_v25 = vadd.f32 %v1615_v21, %v1614_v13 }
 0x130   : > { %v1569_v26 = vpop.f32.mrf.mxu0  ;;  %v1617_v27 = vpop.f32.mrf.mxu1  ;;  %v955_v28 = vadd.f32 %v2151_v59, %v918_v18  ;;  %v971_v29 = vadd.f32 %v2151_v59, %v934_v19 }
 0x131   : > { %1450 = vst [vmem:[%s2162_s21] sm:$0xff] %v1449_v22   ;;  %1533 = vst [vmem:[%s2162_s21 + $0x40] sm:$0xff] %v1489_v23   ;;  %v919_v30 = vmul.f32 %v1568_v24, %v2144_v51  ;;  %v935_v31 = vmul.f32 %v1616_v25, %v2144_v51 }
 0x132   : > { %v1570_v32 = vpop.f32.mrf.mxu0  ;;  %v1618_v33 = vpop.f32.mrf.mxu1  ;;  %v987_v42 = vmax.f32 %v955_v28, 0.0  ;;  %v1003_v43 = vmax.f32 %v971_v29, 0.0 }
 0x133   : > { %v1571_v34 = vadd.f32 %v1570_v32, %v1569_v26  ;;  %v1619_v35 = vadd.f32 %v1618_v33, %v1617_v27  ;;  %v956_v36 = vadd.f32 %v2151_v59, %v919_v30  ;;  %v972_v37 = vadd.f32 %v2151_v59, %v935_v31 }
 0x134   : > { %v1572_v38 = vpop.f32.mrf.mxu0  ;;  %v1620_v39 = vpop.f32.mrf.mxu1 }
 0x135   : > { %v920_v40 = vmul.f32 %v1571_v34, %v2144_v51  ;;  %v936_v41 = vmul.f32 %v1619_v35, %v2144_v51  ;;  %v988_v44 = vmax.f32 %v956_v36, 0.0  ;;  %v1004_v45 = vmax.f32 %v972_v37, 0.0 }
 0x136   : > { %v1573_v46 = vpop.f32.mrf.mxu0  ;;  %v1621_v47 = vpop.f32.mrf.mxu1 }
 0x137   : > { %v1574_v48 = vadd.f32 %v1573_v46, %v1572_v38  ;;  %v1622_v49 = vadd.f32 %v1621_v47, %v1620_v39  ;;  %v1454_v50 = vpack.c.bf16 %v988_v44, %v987_v42  ;;  %v1494_v52 = vpack.c.bf16 %v1004_v45, %v1003_v43 }
 0x138   : > { %v1575_v53 = vpop.f32.mrf.mxu0  ;;  %v1623_v54 = vpop.f32.mrf.mxu1  ;;  %v957_v55 = vadd.f32 %v2151_v59, %v920_v40  ;;  %v973_v56 = vadd.f32 %v2151_v59, %v936_v41 }
 0x139   : > { %v921_v57 = vmul.f32 %v1574_v48, %v2144_v51  ;;  %v937_v58 = vmul.f32 %v1622_v49, %v2144_v51  ;;  %1526 = vst [vmem:[%s2162_s21 + $0x8] sm:$0xff] %v1454_v50   ;;  %1534 = vst [vmem:[%s2162_s21 + $0x48] sm:$0xff] %v1494_v52  }
 0x13a   : > { %v1576_v60 = vpop.f32.mrf.mxu0  ;;  %v1624_v61 = vpop.f32.mrf.mxu1  ;;  %v989_v4 = vmax.f32 %v957_v55, 0.0  ;;  %v1005_v5 = vmax.f32 %v973_v56, 0.0 }
 0x13b   : > { %v958_v62 = vadd.f32 %v2151_v59, %v921_v57  ;;  %v974_v63 = vadd.f32 %v2151_v59, %v937_v58  ;;  %v1577_v0 = vadd.f32 %v1576_v60, %v1575_v53  ;;  %v1625_v1 = vadd.f32 %v1624_v61, %v1623_v54 }
 0x13c   : > { %v1578_v2 = vpop.f32.mrf.mxu0  ;;  %v1626_v3 = vpop.f32.mrf.mxu1 }
 0x13d   : > { %v990_v6 = vmax.f32 %v958_v62, 0.0  ;;  %v1006_v7 = vmax.f32 %v974_v63, 0.0  ;;  %v922_v8 = vmul.f32 %v1577_v0, %v2144_v51  ;;  %v938_v9 = vmul.f32 %v1625_v1, %v2144_v51 }
 0x13e   : > { %v1579_v10 = vpop.f32.mrf.mxu0  ;;  %v1627_v11 = vpop.f32.mrf.mxu1 }
 0x13f   : > { %v1459_v12 = vpack.c.bf16 %v990_v6, %v989_v4  ;;  %v1499_v13 = vpack.c.bf16 %v1006_v7, %v1005_v5  ;;  %v1580_v14 = vadd.f32 %v1579_v10, %v1578_v2  ;;  %v1628_v15 = vadd.f32 %v1627_v11, %v1626_v3 }
 0x140   : > { %v1581_v16 = vpop.f32.mrf.mxu0  ;;  %v1629_v17 = vpop.f32.mrf.mxu1  ;;  %v959_v18 = vadd.f32 %v2151_v59, %v922_v8  ;;  %v975_v19 = vadd.f32 %v2151_v59, %v938_v9 }
 0x141   : > { %1527 = vst [vmem:[%s2162_s21 + $0x10] sm:$0xff] %v1459_v12   ;;  %1535 = vst [vmem:[%s2162_s21 + $0x50] sm:$0xff] %v1499_v13   ;;  %v923_v20 = vmul.f32 %v1580_v14, %v2144_v51  ;;  %v939_v21 = vmul.f32 %v1628_v15, %v2144_v51 }
 0x142   : > { %v1582_v22 = vpop.f32.mrf.mxu0  ;;  %v1630_v23 = vpop.f32.mrf.mxu1  ;;  %v991_v32 = vmax.f32 %v959_v18, 0.0  ;;  %v1007_v33 = vmax.f32 %v975_v19, 0.0 }
 0x143   : > { %v1583_v24 = vadd.f32 %v1582_v22, %v1581_v16  ;;  %v1631_v25 = vadd.f32 %v1630_v23, %v1629_v17  ;;  %v960_v26 = vadd.f32 %v2151_v59, %v923_v20  ;;  %v976_v27 = vadd.f32 %v2151_v59, %v939_v21 }
 0x144   : > { %v1584_v28 = vpop.f32.mrf.mxu0  ;;  %v1632_v29 = vpop.f32.mrf.mxu1 }
 0x145   : > { %v924_v30 = vmul.f32 %v1583_v24, %v2144_v51  ;;  %v940_v31 = vmul.f32 %v1631_v25, %v2144_v51  ;;  %v992_v34 = vmax.f32 %v960_v26, 0.0  ;;  %v1008_v35 = vmax.f32 %v976_v27, 0.0 }
 0x146   : > { %v1585_v36 = vpop.f32.mrf.mxu0  ;;  %v1633_v37 = vpop.f32.mrf.mxu1 }
 0x147   : > { %v1586_v38 = vadd.f32 %v1585_v36, %v1584_v28  ;;  %v1634_v39 = vadd.f32 %v1633_v37, %v1632_v29  ;;  %v1464_v40 = vpack.c.bf16 %v992_v34, %v991_v32  ;;  %v1504_v41 = vpack.c.bf16 %v1008_v35, %v1007_v33 }
 0x148   : > { %v1587_v42 = vpop.f32.mrf.mxu0  ;;  %v1635_v43 = vpop.f32.mrf.mxu1  ;;  %v961_v44 = vadd.f32 %v2151_v59, %v924_v30  ;;  %v977_v45 = vadd.f32 %v2151_v59, %v940_v31 }
 0x149   : > { %v925_v46 = vmul.f32 %v1586_v38, %v2144_v51  ;;  %v941_v47 = vmul.f32 %v1634_v39, %v2144_v51  ;;  %1528 = vst [vmem:[%s2162_s21 + $0x18] sm:$0xff] %v1464_v40   ;;  %1536 = vst [vmem:[%s2162_s21 + $0x58] sm:$0xff] %v1504_v41  }
 0x14a   : > { %v1588_v48 = vpop.f32.mrf.mxu0  ;;  %v1636_v49 = vpop.f32.mrf.mxu1  ;;  %v993_v57 = vmax.f32 %v961_v44, 0.0  ;;  %v1009_v58 = vmax.f32 %v977_v45, 0.0 }
 0x14b   : > { %v962_v50 = vadd.f32 %v2151_v59, %v925_v46  ;;  %v978_v52 = vadd.f32 %v2151_v59, %v941_v47  ;;  %v1589_v53 = vadd.f32 %v1588_v48, %v1587_v42  ;;  %v1637_v54 = vadd.f32 %v1636_v49, %v1635_v43 }
 0x14c   : > { %v1590_v55 = vpop.f32.mrf.mxu0  ;;  %v1638_v56 = vpop.f32.mrf.mxu1 }
 0x14d   : > { %v994_v60 = vmax.f32 %v962_v50, 0.0  ;;  %v1010_v61 = vmax.f32 %v978_v52, 0.0  ;;  %v926_v62 = vmul.f32 %v1589_v53, %v2144_v51  ;;  %v942_v63 = vmul.f32 %v1637_v54, %v2144_v51 }
 0x14e   : > { %v1591_v0 = vpop.f32.mrf.mxu0  ;;  %v1639_v1 = vpop.f32.mrf.mxu1 }
 0x14f   : > { %v1469_v2 = vpack.c.bf16 %v994_v60, %v993_v57  ;;  %v1509_v3 = vpack.c.bf16 %v1010_v61, %v1009_v58  ;;  %v1592_v4 = vadd.f32 %v1591_v0, %v1590_v55  ;;  %v1640_v5 = vadd.f32 %v1639_v1, %v1638_v56 }
 0x150   : > { %v1593_v6 = vpop.f32.mrf.mxu0  ;;  %v1641_v7 = vpop.f32.mrf.mxu1  ;;  %v963_v8 = vadd.f32 %v2151_v59, %v926_v62  ;;  %v979_v9 = vadd.f32 %v2151_v59, %v942_v63 }
 0x151   : > { %1529 = vst [vmem:[%s2162_s21 + $0x20] sm:$0xff] %v1469_v2   ;;  %1537 = vst [vmem:[%s2162_s21 + $0x60] sm:$0xff] %v1509_v3   ;;  %v927_v10 = vmul.f32 %v1592_v4, %v2144_v51  ;;  %v943_v11 = vmul.f32 %v1640_v5, %v2144_v51 }
 0x152   : > { %v1594_v12 = vpop.f32.mrf.mxu0  ;;  %v1642_v13 = vpop.f32.mrf.mxu1  ;;  %v995_v22 = vmax.f32 %v963_v8, 0.0  ;;  %v1011_v23 = vmax.f32 %v979_v9, 0.0 }
 0x153   : > { %v1595_v14 = vadd.f32 %v1594_v12, %v1593_v6  ;;  %v1643_v15 = vadd.f32 %v1642_v13, %v1641_v7  ;;  %v964_v16 = vadd.f32 %v2151_v59, %v927_v10  ;;  %v980_v17 = vadd.f32 %v2151_v59, %v943_v11 }
 0x154   : > { %v1596_v18 = vpop.f32.mrf.mxu0  ;;  %v1644_v19 = vpop.f32.mrf.mxu1 }
 0x155   : > { %v928_v20 = vmul.f32 %v1595_v14, %v2144_v51  ;;  %v944_v21 = vmul.f32 %v1643_v15, %v2144_v51  ;;  %v996_v24 = vmax.f32 %v964_v16, 0.0  ;;  %v1012_v25 = vmax.f32 %v980_v17, 0.0 }
 0x156   : > { %v1597_v26 = vpop.f32.mrf.mxu0  ;;  %v1645_v27 = vpop.f32.mrf.mxu1 }
 0x157   : > { %v1598_v28 = vadd.f32 %v1597_v26, %v1596_v18  ;;  %v1646_v29 = vadd.f32 %v1645_v27, %v1644_v19  ;;  %v1474_v30 = vpack.c.bf16 %v996_v24, %v995_v22  ;;  %v1514_v31 = vpack.c.bf16 %v1012_v25, %v1011_v23 }
 0x158   : > { %v1599_v32 = vpop.f32.mrf.mxu0  ;;  %v1647_v33 = vpop.f32.mrf.mxu1  ;;  %v965_v34 = vadd.f32 %v2151_v59, %v928_v20  ;;  %v981_v35 = vadd.f32 %v2151_v59, %v944_v21 }
 0x159   : > { %v929_v36 = vmul.f32 %v1598_v28, %v2144_v51  ;;  %v945_v37 = vmul.f32 %v1646_v29, %v2144_v51  ;;  %1530 = vst [vmem:[%s2162_s21 + $0x28] sm:$0xff] %v1474_v30   ;;  %1538 = vst [vmem:[%s2162_s21 + $0x68] sm:$0xff] %v1514_v31  }
 0x15a   : > { %v1600_v38 = vpop.f32.mrf.mxu0  ;;  %v1648_v39 = vpop.f32.mrf.mxu1  ;;  %v997_v46 = vmax.f32 %v965_v34, 0.0  ;;  %v1013_v47 = vmax.f32 %v981_v35, 0.0 }
 0x15b   : > { %v966_v40 = vadd.f32 %v2151_v59, %v929_v36  ;;  %v982_v41 = vadd.f32 %v2151_v59, %v945_v37  ;;  %v1601_v42 = vadd.f32 %v1600_v38, %v1599_v32  ;;  %v1649_v43 = vadd.f32 %v1648_v39, %v1647_v33 }
 0x15c   : > { %v1602_v44 = vpop.f32.mrf.mxu0  ;;  %v1650_v45 = vpop.f32.mrf.mxu1 }
 0x15d   : > { %v998_v48 = vmax.f32 %v966_v40, 0.0  ;;  %v1014_v49 = vmax.f32 %v982_v41, 0.0  ;;  %v930_v50 = vmul.f32 %v1601_v42, %v2144_v51  ;;  %v946_v52 = vmul.f32 %v1649_v43, %v2144_v51 }
 0x15e   : > { %v1603_v53 = vpop.f32.mrf.mxu0  ;;  %v1651_v54 = vpop.f32.mrf.mxu1 }
 0x15f   : > { %v1479_v55 = vpack.c.bf16 %v998_v48, %v997_v46  ;;  %v1519_v56 = vpack.c.bf16 %v1014_v49, %v1013_v47  ;;  %v1604_v57 = vadd.f32 %v1603_v53, %v1602_v44  ;;  %v1652_v58 = vadd.f32 %v1651_v54, %v1650_v45 }
 0x160   : > { %v967_v60 = vadd.f32 %v2151_v59, %v930_v50  ;;  %v983_v61 = vadd.f32 %v2151_v59, %v946_v52 }
 0x161   : > { %1531 = vst [vmem:[%s2162_s21 + $0x30] sm:$0xff] %v1479_v55   ;;  %1539 = vst [vmem:[%s2162_s21 + $0x70] sm:$0xff] %v1519_v56   ;;  %v931_v62 = vmul.f32 %v1604_v57, %v2144_v51  ;;  %v947_v63 = vmul.f32 %v1652_v58, %v2144_v51 }
 0x162   : > { %v999_v2 = vmax.f32 %v967_v60, 0.0  ;;  %v1015_v3 = vmax.f32 %v983_v61, 0.0 }
 0x163   : > { %v968_v0 = vadd.f32 %v2151_v59, %v931_v62  ;;  %v984_v1 = vadd.f32 %v2151_v59, %v947_v63 }
 0x165   : > { %v1000_v4 = vmax.f32 %v968_v0, 0.0  ;;  %v1016_v5 = vmax.f32 %v984_v1, 0.0 }
 0x167   : > { %v1484_v51 = vpack.c.bf16 %v1000_v4, %v999_v2  ;;  %v1524_v6 = vpack.c.bf16 %v1016_v5, %v1015_v3 }
 0x169   : > { %1532 = vst [vmem:[%s2162_s21 + $0x38] sm:$0xff] %v1484_v51   ;;  %1540 = vst [vmem:[%s2162_s21 + $0x78] sm:$0xff] %v1524_v6  }
 0x16a   : > { %1879 = shalt.err (!%p1876_p3)
}
 0x16b   : > { %s1880_s30 = scalar_lea.hbm %s2237_s25, 2048  ;;  %s1884_s24 = scalar_lea.hbm %s2291_s3, 16384 }
 0x16c   : > { %p1881_p5 = scmp.ne.s32.totalorder %s2237_s25, %s1880_s30  ;;  %p1885_p6 = scmp.lt.s32.totalorder %s2237_s25, %s2291_s3 }
 0x16d   : > { %p1886_p11 = scmp.lt.s32.totalorder %s1884_s24, %s1880_s30 }
 0x16e   : > { %p1882_p7 = pnand %p1881_p5, %p2302_p4 }
 0x16f   : > { %p1887_p10 = por %p1886_p11, %p1885_p6 }
 0x170   : > { %p1883_p9 = pneg %p1882_p7 }
 0x172   : > { %p1888_p1 = pnand %p1887_p10, %p1883_p9 }
 0x174   : > { %1891 = shalt.err (!%p1888_p1)
}
 0x175   : > { %s1959_s21 = smov 64   ;;  %s1960_s5 = smov 4  }
 0x176   : > { %1675 = dma.vmem_to_hbm [thread:$0]  (%p2302_p4), %s2239_s6, 2048, %s2237_s25, %s1178_s15, %s1959_s21, %s1959_s21, %s1960_s5  }
 0x177 PF: > { %p1692_p8 = scmp.ge.s32.totalorder %s1950_s17, 2  ;;  %s1207_s7 = sand.u32 1, %s1930_s12  }
 0x178   : > { %p2303_p12 = scmp.ne.s32.totalorder %s2296_s23, 0  ;;  %s1208_s10 = scalar_lea.sflag [#allocation5], %s1207_s7 }
 0x17a   : > { %p1686_p13 = pnand %p1692_p8, %p2303_p12 }
 0x17c   : > { %p1687_p0 = pneg %p1686_p13 }
 0x17e   : > { %1925 = dma.done.wait (%p1687_p0), %s1208_s10, 2048  }
 0x17f   : > { %1927 = vsyncadd (%p1687_p0), %s1208_s10, 4294965248  ;;  %s20_s17 = sadd.s32 1, %s1950_s17   ;;  %s2304_s12 = smov %s1934_s13 }
 0x180   : > { %p17_p2 = scmp.ge.s32.totalorder %s20_s17, 10   ;;  %s2305_s13 = smov %s1938_s14 }
 0x181   : > { %s2306_s14 = smov %s2076_s19  ;;  %s2307_s15 = smov %s1946_s16 }
 0x182   : > { %s2308_s16 = smov %s2310_s28  ;;  %19 = sbr.rel (!%p17_p2) target bundleno = 7 (0x7), region = 93 }
 0x187   :  { %1213 = vsyncpa [#allocation4], 1 }
 0x188   :  { %1215 = vsyncpa [#allocation4 + $0x1], 1 }
 0x189   :  { %1216 = vsyncpa [#allocation7], 1 }
 0x18a   :  { %1217 = vsyncpa [#allocation5], 1 }
 0x18b   :  { %1219 = vsyncpa [#allocation5 + $0x1], 1 }

</bundles_post_ra>
